<compile_context>
chip_gen: v7x
topology: tpu7x:2x2x1
jax: 0.10.0
libtpu: 0.0.40
codegen_flags: <defaults>
</compile_context>

<pallas_src>
import functools

import jax
import jax.numpy as jnp
import numpy as np
from jax.experimental import pallas as pl
from jax.experimental.pallas import tpu as pltpu

M_MEMBERS = 3                      # ensemble size
VARIANCE_THRESHOLD = 0.03
# TODO(synk): the torch forward also computes output_c_entropy (Categorical
# entropy) and print()s intermediates; neither affects the returned values, so
# they are intentionally not implemented (avoids dead EUP work and the
# 0*log(0) NaN hazard).

LANE = 128
# (Cin+Cout) * tile * 4B * 2 double-buffers ~= 2 MiB at Cin=Cout=4 and
# tile=32768 -> comfortably inside the 32 MiB scoped VMEM on every generation
# (v5e/v6e 128 MiB, v7x 64 MiB physical).
MAX_TILE_HW = 32768


def _sigmoid(x):
    # sigmoid(x) == 0.5*tanh(0.5*x) + 0.5 : a single EUP push instead of
    # exp + reciprocal.
    return 0.5 * jnp.tanh(0.5 * x) + 0.5


# ----------------------------------------------------------------------------
# Fused kernel: per-member 1x1 conv + sigmoid + member-mean, streaming global
# average-pool accumulation, and (at the last HW tile) the classifier +
# ensemble-statistics epilogue.
# ----------------------------------------------------------------------------
def _fused_kernel(x_ref, w_ref, b_ref, avg_ref, wct_ref, bc_ref,
                  ox_ref, oc_ref, pool_ref, *, hw, tile_hw):
    # x_ref:    [1, Cin, T]       lane-dense spatial tile (T = tile_hw)
    # w_ref:    [M*Cout, Cin]     fused member conv weights
    # b_ref:    [M*Cout, 1]       fused member conv biases
    # avg_ref:  [Cout, M*Cout]    constant member-averaging matrix (entries 1/M)
    # wct_ref:  [M, Cin]          classifier weights^T with GAP 1/HW folded in
    # bc_ref:   [M, 1]            classifier biases
    # ox_ref:   [1, Cout, T]      ensemble-mean of sigmoid(conv) for this tile
    # oc_ref:   [1, 1, 1]         output_c_final for this image (written at last t)
    # pool_ref: [Cin, 1] scratch  per-image channel sums, resident over t axis
    t = pl.program_id(1)
    x = x_ref[0]                                               # [Cin, T]

    # ---- fused M-member 1x1 conv + sigmoid + member-mean --------------------
    y = jnp.dot(w_ref[...], x, preferred_element_type=jnp.float32) + b_ref[...]
    s = _sigmoid(y)                                            # [M*Cout, T]
    # Member-mean via one extra MXU push (MXU is idle here; avoids sub-8-row
    # sublane slicing on the VPU/XLU).
    ox_ref[0] = jnp.dot(avg_ref[...], s,
                        preferred_element_type=jnp.float32).astype(ox_ref.dtype)

    # ---- global-average-pool accumulation (channel-on-sublane scratch) ------
    @pl.when(t == 0)
    def _():
        pool_ref[...] = jnp.zeros_like(pool_ref)

    if hw % tile_hw != 0:
        # Last tile is partial: OOB input lanes are undefined on TPU, so mask
        # their contribution to the pooled sums (output OOB stores are masked
        # by Pallas automatically).
        lane = jax.lax.broadcasted_iota(jnp.int32, x.shape, dimension=1)
        valid = (t * tile_hw + lane) < hw
        x_pool = jnp.where(valid, x, 0.0)
    else:
        x_pool = x
    pool_ref[...] = pool_ref[...] + jnp.sum(x_pool, axis=-1, keepdims=True)

    # ---- classifier + ensemble statistics epilogue (once per image) ---------
    @pl.when(t == pl.num_programs(1) - 1)
    def _():
        # logits[m] = (pool_sum / HW) @ w_c[:, m] + b_c[m]   (1/HW folded in wct)
        logits = jnp.dot(wct_ref[...], pool_ref[...],
                         preferred_element_type=jnp.float32) + bc_ref[...]  # [M,1]
        c = _sigmoid(logits)                                                # per-member output_c
        mean = jnp.mean(c, axis=0, keepdims=True)                           # [1,1]
        # torch.var(..., dim=0) is unbiased -> divide by (M-1)
        var = jnp.sum((c - mean) ** 2, axis=0, keepdims=True) * (1.0 / (M_MEMBERS - 1))
        var_arg = (var + (0.5 - VARIANCE_THRESHOLD) - 0.5) * (1.0 / 0.01)
        var_sig = _sigmoid(var_arg)
        # torch.max(stack([mean, var_sig]), dim=0).values == elementwise max
        oc_ref[0] = jnp.maximum(mean, var_sig)


def _pick_tile_hw(hw):
    if hw <= MAX_TILE_HW:
        return hw                       # full extent: block dim == array dim, always legal
    # Prefer a lane-aligned tile that divides HW exactly (no partial tile,
    # no in-kernel pool masking).
    for t in range(MAX_TILE_HW, 0, -LANE):
        if hw % t == 0:
            return t
    return MAX_TILE_HW                  # partial last tile; masked in-kernel


def ensemble_fused(x_bcp, w_fused, b_fused, avg_mat, wc_t, bc,
                   cout, hw, tile_hw, out_dtype=jnp.float32):
    B, C, _ = x_bcp.shape
    mcout = w_fused.shape[0]
    M = wc_t.shape[0]
    n_t = pl.cdiv(hw, tile_hw)
    kernel = functools.partial(_fused_kernel, hw=hw, tile_hw=tile_hw)
    return pl.pallas_call(
        kernel,
        out_shape=(
            jax.ShapeDtypeStruct((B, cout, hw), out_dtype),   # NCHW-flat conv mean
            jax.ShapeDtypeStruct((B, 1, 1), jnp.float32),     # output_c_final
        ),
        grid_spec=pltpu.PrefetchScalarGridSpec(
            num_scalar_prefetch=0,
            grid=(B, n_t),
            in_specs=[
                pl.BlockSpec((1, C, tile_hw), lambda b, t: (b, 0, t)),
                pl.BlockSpec((mcout, C), lambda b, t: (0, 0)),
                pl.BlockSpec((mcout, 1), lambda b, t: (0, 0)),
                pl.BlockSpec((cout, mcout), lambda b, t: (0, 0)),
                pl.BlockSpec((M, C), lambda b, t: (0, 0)),
                pl.BlockSpec((M, 1), lambda b, t: (0, 0)),
            ],
            out_specs=(
                pl.BlockSpec((1, cout, tile_hw), lambda b, t: (b, 0, t)),
                pl.BlockSpec((1, 1, 1), lambda b, t: (b, 0, 0)),  # resident over t
            ),
            scratch_shapes=[pltpu.VMEM((C, 1), jnp.float32)],     # pool accumulator
        ),
        compiler_params=pltpu.CompilerParams(
            dimension_semantics=("parallel", "arbitrary"),
            vmem_limit_bytes=32 * 1024 * 1024,
        ),
    )(x_bcp, w_fused, b_fused, avg_mat, wc_t, bc)


# ----------------------------------------------------------------------------
# Wrapper: XRayNetEnsemble.forward
# ----------------------------------------------------------------------------
def xray_net_ensemble_forward(x_nchw, params):
    B, C, H, W = x_nchw.shape
    w_x, b_x, w_c, b_c = params          # w_x:[M,Cin,Cout] b_x:[M,Cout] w_c:[Cin,M] b_c:[1,M]
    M, _, cout = w_x.shape
    HW = H * W

    # Channels on sublanes, spatial on lanes; no padding / slicing passes.
    x_flat = x_nchw.reshape(B, C, HW)
    tile_hw = _pick_tile_hw(HW)

    # Fuse the M member conv weights: out[m*Cout+d, :] = sum_c w_x[m,c,d] * x[c,:]
    w_fused = jnp.transpose(w_x, (0, 2, 1)).reshape(M * cout, C)
    b_fused = b_x.reshape(M * cout, 1)
    # Constant member-averaging matrix for the MXU: A[d, m*Cout+d] = 1/M.
    avg_mat = jnp.tile(jnp.eye(cout, dtype=jnp.float32), (1, M)) * (1.0 / M)
    # Classifier weights^T with the GAP division (1/HW) folded in.
    wc_t = (w_c * (1.0 / HW)).T
    bc = b_c.reshape(M, 1)

    # TODO(synk): on v5e an out_dtype=bfloat16 store halves the output HBM write;
    # kept float32 here to satisfy the 1e-4 correctness check.
    out_x, out_c = ensemble_fused(x_flat, w_fused, b_fused, avg_mat, wc_t, bc,
                                  cout, HW, tile_hw, out_dtype=jnp.float32)
    return out_x.reshape(B, cout, H, W), out_c.reshape(-1)


def init_params(key, c_in, c_out):
    k1, k2, k3, k4 = jax.random.split(key, 4)
    w_x = jax.random.normal(k1, (M_MEMBERS, c_in, c_out), jnp.float32) * 0.3
    b_x = jax.random.normal(k2, (M_MEMBERS, c_out), jnp.float32) * 0.1
    w_c = jax.random.normal(k3, (c_in, M_MEMBERS), jnp.float32) * 0.5
    b_c = jax.random.normal(k4, (1, M_MEMBERS), jnp.float32) * 0.1
    return w_x, b_x, w_c, b_c


# ----------------------------------------------------------------------------
# Pure-JAX reference (for correctness check only)
# ----------------------------------------------------------------------------
def _reference_forward(x, params):
    w_x, b_x, w_c, b_c = params
    outs_x, outs_c = [], []
    pooled = jnp.mean(x, axis=(2, 3))                                 # [B, Cin]
    for m in range(M_MEMBERS):
        y = jnp.einsum("bchw,cd->bdhw", x, w_x[m]) + b_x[m][None, :, None, None]
        outs_x.append(jax.nn.sigmoid(y))
        outs_c.append(jax.nn.sigmoid(pooled @ w_c[:, m] + b_c[0, m]))  # [B]
    ox_mean = jnp.mean(jnp.stack(outs_x), axis=0)
    cmat = jnp.stack(outs_c)                                           # [M, B]
    c_mean = jnp.mean(cmat, axis=0)
    c_var = jnp.var(cmat, axis=0, ddof=1) + (0.5 - VARIANCE_THRESHOLD)
    c_var = jax.nn.sigmoid((c_var - 0.5) / 0.01)
    return ox_mean, jnp.maximum(c_mean, c_var)


if __name__ == "__main__":
    B, C_IN, H, W = 2, 4, 16, 16
    C_OUT = 4

    key = jax.random.PRNGKey(0)
    kx, kp = jax.random.split(key)
    x = jax.random.normal(kx, (B, C_IN, H, W), jnp.float32)
    params = init_params(kp, C_IN, C_OUT)

    fwd = jax.jit(xray_net_ensemble_forward)
    output_x_mean, output_c_final = fwd(x, params)
    jax.block_until_ready((output_x_mean, output_c_final))

    assert output_x_mean.shape == (B, C_OUT, H, W)
    assert output_c_final.shape == (B,)

    ref_x, ref_c = _reference_forward(x, params)
    np.testing.assert_allclose(np.asarray(output_x_mean), np.asarray(ref_x),
                               rtol=1e-4, atol=1e-4)
    np.testing.assert_allclose(np.asarray(output_c_final), np.asarray(ref_c),
                               rtol=1e-4, atol=1e-4)

    print("KERNEL_OK")
</pallas_src>

<mosaic_0001>
module attributes {stable_mosaic.version = 11 : i64} {
  func.func @_fused_kernel(%arg0: i32, %arg1: i32, %arg2: memref<1x4x256xf32, #tpu.memory_space<vmem>>, %arg3: memref<12x4xf32, #tpu.memory_space<vmem>>, %arg4: memref<12x1xf32, #tpu.memory_space<vmem>>, %arg5: memref<4x12xf32, #tpu.memory_space<vmem>>, %arg6: memref<3x4xf32, #tpu.memory_space<vmem>>, %arg7: memref<3x1xf32, #tpu.memory_space<vmem>>, %arg8: memref<1x4x256xf32, #tpu.memory_space<vmem>>, %arg9: memref<1x1x1xf32, #tpu.memory_space<vmem>>, %arg10: memref<4x1xf32, #tpu.memory_space<vmem>>) attributes {dimension_semantics = [#tpu.dimension_semantics<parallel>, #tpu.dimension_semantics<arbitrary>], iteration_bounds = array<i64: 2, 1>, scalar_prefetch = 0 : i64, scratch_operands = 1 : i64, tpu.core_type = #tpu.core_type<tc>, window_params = [{transform_indices = @transform_0, window_bounds = array<i64: 1, 4, 256>}, {pipeline_mode = #tpu.pipeline_mode<synchronous>, transform_indices = @transform_1, window_bounds = array<i64: 12, 4>}, {pipeline_mode = #tpu.pipeline_mode<synchronous>, transform_indices = @transform_2, window_bounds = array<i64: 12, 1>}, {pipeline_mode = #tpu.pipeline_mode<synchronous>, transform_indices = @transform_3, window_bounds = array<i64: 4, 12>}, {pipeline_mode = #tpu.pipeline_mode<synchronous>, transform_indices = @transform_4, window_bounds = array<i64: 3, 4>}, {pipeline_mode = #tpu.pipeline_mode<synchronous>, transform_indices = @transform_5, window_bounds = array<i64: 3, 1>}, {transform_indices = @transform_6, window_bounds = array<i64: 1, 4, 256>}, {transform_indices = @transform_7, window_bounds = array<i64: 1, 1, 1>}]} {
    %c0 = arith.constant 0 : index
    %c0_0 = arith.constant 0 : index
    %c0_1 = arith.constant 0 : index
    %0 = vector.load %arg2[%c0, %c0_0, %c0_1] : memref<1x4x256xf32, #tpu.memory_space<vmem>>, vector<1x4x256xf32>
    %1 = vector.shape_cast %0 : vector<1x4x256xf32> to vector<4x256xf32>
    %c0_2 = arith.constant 0 : index
    %c0_3 = arith.constant 0 : index
    %2 = vector.load %arg3[%c0_2, %c0_3] : memref<12x4xf32, #tpu.memory_space<vmem>>, vector<12x4xf32>
    %cst = arith.constant dense<0.000000e+00> : vector<12x256xf32>
    %3 = tpu.matmul %2, %1, %cst {dimension_numbers = #tpu.dot_dimension_numbers<[1], [0], [0], [1], [0, 0, 1, 1], [], []>} : vector<12x4xf32>, vector<4x256xf32>, vector<12x256xf32> -> vector<12x256xf32>
    %c0_4 = arith.constant 0 : index
    %c0_5 = arith.constant 0 : index
    %4 = vector.load %arg4[%c0_4, %c0_5] : memref<12x1xf32, #tpu.memory_space<vmem>>, vector<12x1xf32>
    %5 = vector.broadcast %4 : vector<12x1xf32> to vector<12x256xf32>
    %6 = arith.addf %3, %5 : vector<12x256xf32>
    %cst_6 = arith.constant 5.000000e-01 : f32
    %7 = vector.broadcast %cst_6 : f32 to vector<12x256xf32>
    %8 = arith.mulf %7, %6 : vector<12x256xf32>
    %9 = math.tanh %8 : vector<12x256xf32>
    %cst_7 = arith.constant 5.000000e-01 : f32
    %10 = vector.broadcast %cst_7 : f32 to vector<12x256xf32>
    %11 = arith.mulf %10, %9 : vector<12x256xf32>
    %cst_8 = arith.constant 5.000000e-01 : f32
    %12 = vector.broadcast %cst_8 : f32 to vector<12x256xf32>
    %13 = arith.addf %11, %12 : vector<12x256xf32>
    %c0_9 = arith.constant 0 : index
    %c0_10 = arith.constant 0 : index
    %14 = vector.load %arg5[%c0_9, %c0_10] : memref<4x12xf32, #tpu.memory_space<vmem>>, vector<4x12xf32>
    %cst_11 = arith.constant dense<0.000000e+00> : vector<4x256xf32>
    %15 = tpu.matmul %14, %13, %cst_11 {dimension_numbers = #tpu.dot_dimension_numbers<[1], [0], [0], [1], [0, 0, 1, 1], [], []>} : vector<4x12xf32>, vector<12x256xf32>, vector<4x256xf32> -> vector<4x256xf32>
    %c0_12 = arith.constant 0 : index
    %c0_13 = arith.constant 0 : index
    %c0_14 = arith.constant 0 : index
    %16 = vector.load %arg8[%c0_12, %c0_13, %c0_14] : memref<1x4x256xf32, #tpu.memory_space<vmem>>, vector<1x4x256xf32>
    %17 = vector.shape_cast %16 : vector<1x4x256xf32> to vector<4x256xf32>
    %18 = vector.shape_cast %15 : vector<4x256xf32> to vector<1x4x256xf32>
    tpu.vector_store %arg8[%c0_12, %c0_13, %c0_14], %18 {strides = array<i32>} : memref<1x4x256xf32, #tpu.memory_space<vmem>>, vector<1x4x256xf32>,
    %c0_i32 = arith.constant 0 : i32
    %19 = arith.cmpi eq, %arg1, %c0_i32 : i32
    %20 = arith.extui %19 : i1 to i32
    %c0_i32_15 = arith.constant 0 : i32
    %21 = arith.cmpi ne, %20, %c0_i32_15 : i32
    scf.if %21 {
      %cst_23 = arith.constant 0.000000e+00 : f32
      %30 = vector.broadcast %cst_23 : f32 to vector<4x1xf32>
      %c0_24 = arith.constant 0 : index
      %c0_25 = arith.constant 0 : index
      %31 = vector.load %arg10[%c0_24, %c0_25] : memref<4x1xf32, #tpu.memory_space<vmem>>, vector<4x1xf32>
      tpu.vector_store %arg10[%c0_24, %c0_25], %30 {strides = array<i32>} : memref<4x1xf32, #tpu.memory_space<vmem>>, vector<4x1xf32>,
    } else {
    }
    %c0_16 = arith.constant 0 : index
    %c0_17 = arith.constant 0 : index
    %22 = vector.load %arg10[%c0_16, %c0_17] : memref<4x1xf32, #tpu.memory_space<vmem>>, vector<4x1xf32>
    %cst_18 = arith.constant dense<0.000000e+00> : vector<4xf32>
    %23 = vector.multi_reduction <add>, %1, %cst_18 [1] : vector<4x256xf32> to vector<4xf32>
    %24 = vector.shape_cast %23 : vector<4xf32> to vector<4x1xf32>
    %25 = arith.addf %22, %24 : vector<4x1xf32>
    %c0_19 = arith.constant 0 : index
    %c0_20 = arith.constant 0 : index
    %26 = vector.load %arg10[%c0_19, %c0_20] : memref<4x1xf32, #tpu.memory_space<vmem>>, vector<4x1xf32>
    tpu.vector_store %arg10[%c0_19, %c0_20], %25 {strides = array<i32>} : memref<4x1xf32, #tpu.memory_space<vmem>>, vector<4x1xf32>,
    %c0_i32_21 = arith.constant 0 : i32
    %27 = arith.cmpi eq, %arg1, %c0_i32_21 : i32
    %28 = arith.extui %27 : i1 to i32
    %c0_i32_22 = arith.constant 0 : i32
    %29 = arith.cmpi ne, %28, %c0_i32_22 : i32
    scf.if %29 {
      %c0_23 = arith.constant 0 : index
      %c0_24 = arith.constant 0 : index
      %30 = vector.load %arg6[%c0_23, %c0_24] : memref<3x4xf32, #tpu.memory_space<vmem>>, vector<3x4xf32>
      %c0_25 = arith.constant 0 : index
      %c0_26 = arith.constant 0 : index
      %31 = vector.load %arg10[%c0_25, %c0_26] : memref<4x1xf32, #tpu.memory_space<vmem>>, vector<4x1xf32>
      %cst_27 = arith.constant dense<0.000000e+00> : vector<3x1xf32>
      %32 = tpu.matmul %30, %31, %cst_27 {dimension_numbers = #tpu.dot_dimension_numbers<[1], [0], [0], [1], [0, 0, 1, 1], [], []>} : vector<3x4xf32>, vector<4x1xf32>, vector<3x1xf32> -> vector<3x1xf32>
      %c0_28 = arith.constant 0 : index
      %c0_29 = arith.constant 0 : index
      %33 = vector.load %arg7[%c0_28, %c0_29] : memref<3x1xf32, #tpu.memory_space<vmem>>, vector<3x1xf32>
      %34 = arith.addf %32, %33 : vector<3x1xf32>
      %cst_30 = arith.constant 5.000000e-01 : f32
      %35 = vector.broadcast %cst_30 : f32 to vector<3x1xf32>
      %36 = arith.mulf %35, %34 : vector<3x1xf32>
      %37 = math.tanh %36 : vector<3x1xf32>
      %cst_31 = arith.constant 5.000000e-01 : f32
      %38 = vector.broadcast %cst_31 : f32 to vector<3x1xf32>
      %39 = arith.mulf %38, %37 : vector<3x1xf32>
      %cst_32 = arith.constant 5.000000e-01 : f32
      %40 = vector.broadcast %cst_32 : f32 to vector<3x1xf32>
      %41 = arith.addf %39, %40 : vector<3x1xf32>
      %cst_33 = arith.constant dense<0.000000e+00> : vector<1xf32>
      %42 = vector.multi_reduction <add>, %41, %cst_33 [0] : vector<3x1xf32> to vector<1xf32>
      %43 = vector.shape_cast %42 : vector<1xf32> to vector<1x1xf32>
      %cst_34 = arith.constant 3.000000e+00 : f32
      %44 = vector.broadcast %cst_34 : f32 to vector<1x1xf32>
      %45 = arith.divf %43, %44 : vector<1x1xf32>
      %46 = vector.broadcast %45 : vector<1x1xf32> to vector<3x1xf32>
      %47 = arith.subf %41, %46 : vector<3x1xf32>
      %48 = arith.mulf %47, %47 : vector<3x1xf32>
      %cst_35 = arith.constant dense<0.000000e+00> : vector<1xf32>
      %49 = vector.multi_reduction <add>, %48, %cst_35 [0] : vector<3x1xf32> to vector<1xf32>
      %50 = vector.shape_cast %49 : vector<1xf32> to vector<1x1xf32>
      %cst_36 = arith.constant 5.000000e-01 : f32
      %51 = vector.broadcast %cst_36 : f32 to vector<1x1xf32>
      %52 = arith.mulf %50, %51 : vector<1x1xf32>
      %cst_37 = arith.constant 4.700000e-01 : f32
      %53 = vector.broadcast %cst_37 : f32 to vector<1x1xf32>
      %54 = arith.addf %52, %53 : vector<1x1xf32>
      %cst_38 = arith.constant 5.000000e-01 : f32
      %55 = vector.broadcast %cst_38 : f32 to vector<1x1xf32>
      %56 = arith.subf %54, %55 : vector<1x1xf32>
      %cst_39 = arith.constant 1.000000e+02 : f32
      %57 = vector.broadcast %cst_39 : f32 to vector<1x1xf32>
      %58 = arith.mulf %56, %57 : vector<1x1xf32>
      %cst_40 = arith.constant 5.000000e-01 : f32
      %59 = vector.broadcast %cst_40 : f32 to vector<1x1xf32>
      %60 = arith.mulf %59, %58 : vector<1x1xf32>
      %61 = math.tanh %60 : vector<1x1xf32>
      %cst_41 = arith.constant 5.000000e-01 : f32
      %62 = vector.broadcast %cst_41 : f32 to vector<1x1xf32>
      %63 = arith.mulf %62, %61 : vector<1x1xf32>
      %cst_42 = arith.constant 5.000000e-01 : f32
      %64 = vector.broadcast %cst_42 : f32 to vector<1x1xf32>
      %65 = arith.addf %63, %64 : vector<1x1xf32>
      %66 = arith.maximumf %45, %65 : vector<1x1xf32>
      %c0_43 = arith.constant 0 : index
      %c0_44 = arith.constant 0 : index
      %c0_45 = arith.constant 0 : index
      %67 = vector.load %arg9[%c0_43, %c0_44, %c0_45] : memref<1x1x1xf32, #tpu.memory_space<vmem>>, vector<1x1x1xf32>
      %68 = vector.shape_cast %67 : vector<1x1x1xf32> to vector<1x1xf32>
      %69 = vector.shape_cast %66 : vector<1x1xf32> to vector<1x1x1xf32>
      tpu.vector_store %arg9[%c0_43, %c0_44, %c0_45], %69 {strides = array<i32>} : memref<1x1x1xf32, #tpu.memory_space<vmem>>, vector<1x1x1xf32>,
    } else {
    }
    return
  }
  func.func @transform_0(%arg0: i32, %arg1: i32) -> (i32, i32, i32) {
    %c0_i32 = arith.constant 0 : i32
    %c0_i32_0 = arith.constant 0 : i32
    return %arg0, %c0_i32, %arg1 : i32, i32, i32
  }
  func.func @transform_1(%arg0: i32, %arg1: i32) -> (i32, i32) {
    %c0_i32 = arith.constant 0 : i32
    %c0_i32_0 = arith.constant 0 : i32
    %c0_i32_1 = arith.constant 0 : i32
    return %c0_i32, %c0_i32_0 : i32, i32
  }
  func.func @transform_2(%arg0: i32, %arg1: i32) -> (i32, i32) {
    %c0_i32 = arith.constant 0 : i32
    %c0_i32_0 = arith.constant 0 : i32
    %c0_i32_1 = arith.constant 0 : i32
    return %c0_i32, %c0_i32_0 : i32, i32
  }
  func.func @transform_3(%arg0: i32, %arg1: i32) -> (i32, i32) {
    %c0_i32 = arith.constant 0 : i32
    %c0_i32_0 = arith.constant 0 : i32
    %c0_i32_1 = arith.constant 0 : i32
    return %c0_i32, %c0_i32_0 : i32, i32
  }
  func.func @transform_4(%arg0: i32, %arg1: i32) -> (i32, i32) {
    %c0_i32 = arith.constant 0 : i32
    %c0_i32_0 = arith.constant 0 : i32
    %c0_i32_1 = arith.constant 0 : i32
    return %c0_i32, %c0_i32_0 : i32, i32
  }
  func.func @transform_5(%arg0: i32, %arg1: i32) -> (i32, i32) {
    %c0_i32 = arith.constant 0 : i32
    %c0_i32_0 = arith.constant 0 : i32
    %c0_i32_1 = arith.constant 0 : i32
    return %c0_i32, %c0_i32_0 : i32, i32
  }
  func.func @transform_6(%arg0: i32, %arg1: i32) -> (i32, i32, i32) {
    %c0_i32 = arith.constant 0 : i32
    %c0_i32_0 = arith.constant 0 : i32
    return %arg0, %c0_i32, %arg1 : i32, i32, i32
  }
  func.func @transform_7(%arg0: i32, %arg1: i32) -> (i32, i32, i32) {
    %c0_i32 = arith.constant 0 : i32
    %c0_i32_0 = arith.constant 0 : i32
    %c0_i32_1 = arith.constant 0 : i32
    return %arg0, %c0_i32, %c0_i32_0 : i32, i32, i32
  }
}

</mosaic_0001>

<bundles_post_ra>
// kernel: xray_net_ensemble_forward.1
= control target key start
LH: loop header
LB: loop body
LE: loop exit
PB: predicated region body
PF: predicated region fallthrough
CT: control target
= control target key end

     0   :  { %s926_s24 = smov 0   ;;  %s928_s25 = smov 0   ;;  %s1006_s0 = inlined_call_operand.vmem [shape: f32[2,4,256], index: 0, kind: input, shape index: {}]   ;;  %s1007_s1 = inlined_call_operand.vmem [shape: f32[12,4], index: 1, kind: input, shape index: {}]   ;;  %s1008_s2 = inlined_call_operand.vmem [shape: f32[12,1], index: 2, kind: input, shape index: {}]   ;;  %s1009_s3 = inlined_call_operand.vmem [shape: f32[4,12], index: 3, kind: input, shape index: {}]   ;;  %s1010_s4 = inlined_call_operand.vmem [shape: f32[3,4], index: 4, kind: input, shape index: {}]   ;;  %s1011_s5 = inlined_call_operand.vmem [shape: f32[3,1], index: 5, kind: input, shape index: {}]   ;;  %s1012_s6 = inlined_call_operand.vmem [shape: f32[2,4,256], index: 6, kind: output, shape index: {0}]   ;;  %s1013_s7 = inlined_call_operand.vmem [shape: f32[2,1,1], index: 7, kind: output, shape index: {1}]  }
   0x1   :  { %s930_s26 = smov 0  }
   0x2 LB: > { %s30_s27 = sadd.s32 1, %s876_s25  ;;  %p784_p0 = scmp.ge.s32.totalorder %s880_s26, 1  ;;  %s880_s26 = sphi %s930_s26, %s18_s26   ;;  %s876_s25 = sphi %s928_s25, %s1015_s25   ;;  %s872_s24 = sphi %s926_s24, %s1014_s24  }
   0x3   : > { %p32_p1 = scmp.ge.s32.totalorder %s30_s27, 2  ;;  %p261_p2 = scmp.lt.s32.totalorder %s880_s26, 3 }
   0x5   : > { %s1017_s27 = smov (%p32_p1, %s30_s27), 0  ;;  %p262_p3 = pnand %p784_p0, %p261_p2 }
   0x6   : > { %p305_p4 = scmp.lt.s32.totalorder (!%p262_p3), %s872_s24, 1  ;;  %v882_v0 = vmov (!%p262_p3), 0.0   ;;  %v883_v1 = vmov (!%p262_p3), 0   ;;  %v330_v2 = vld [vmem:[%s1008_s2] sm:$0xff] (!%p262_p3)  ;;  %v331_v3 = vld [vmem:[%s1008_s2 + $0x8] sm:$0xf] (!%p262_p3) }
   0x7   : > { %265 = sbr.rel (%p262_p3) target bundleno = 559 (0x22f), region = 44  ;;  %420 = vmatprep.mubr.f32.mxu0 (!%p262_p3), %v882_v0  ;;  %844 = vset.pattern.permute.xlu0 (!%p262_p3), %v883_v1  ;;  %vm351_vm0 = vcmask (!%p262_p3), 1043456   ;;  %v328_v7 = vld [vmem:[%s1007_s1] sm:$0xff] (!%p262_p3)  ;;  %vm344_vm1 = vcmask (!%p262_p3), 31744   ;;  %v329_v10 = vld [vmem:[%s1007_s1 + $0x8] sm:$0xf] (!%p262_p3) }
   0x8   : > { %334 = vperm.xlu0 (!%p262_p3), %844, %v330_v2   ;;  %524 = vmatprep.mubr.f32.mxu1 (!%p262_p3), %v882_v0  ;;  %vm540_vm2 = vcmask (!%p262_p3), 3072   ;;  %vm884_vm3 = vmmov (!%p262_p3), 1   ;;  %v449_v42 = vld [vmem:[%s1009_s3] sm:$0xf] (!%p262_p3)  ;;  %vm450_vm5 = vcmask (!%p262_p3), 97280   ;;  %vm885_vm6 = vmmov (!%p262_p3), 0  }
   0x9   : > { %541 = vst.msk [vmem:[#allocation2] sm:$0xf] (!%p262_p3), %vm540_vm2, %v882_v0  ;;  %vm811_vm4 = vmpackc.low (!%p262_p3), %vm351_vm0, %vm884_vm3  ;;  %v555_v44 = vld [vmem:[%s1010_s4] sm:$0x7] (!%p262_p3)  ;;  %vm638_vm7 = vcmask (!%p262_p3), 2048   ;;  %vm666_vm8 = vcmask (!%p262_p3), 0  }
   0xa   : > { %v557_v48 = vld [vmem:[%s1011_s5] sm:$0x7] (!%p262_p3) }
   0xc   : > { %339 = vperm.xlu0 (!%p262_p3), %844, %v331_v3  }
   0xe   : > { %s1019_s24 = smov (!%p305_p4, %s872_s24), 1 }
   0xf   : > { %s801_s9 = sshll.u32 %s1019_s24, 3 }
  0x10   : > { %s312_s12 = scalar_lea.vmem %s1006_s0, %s801_s9  ;;  %v542_v11 = vld [vmem:[#allocation2] sm:$0xf]  ;;  %s322_s23 = scalar_lea.vmem %s1012_s6, %s801_s9 }
  0x11   : > { %v327_v4 = vld [vmem:[%s312_s12] sm:$0xff]  ;;  %s326_s9 = scalar_lea.vmem %s1013_s7, %s1019_s24 }
  0x12   : > { %v343_v5 = vcombine.high %v327_v4, %v327_v4  ;;  %v544_v6 = vsel %vm351_vm0, %v327_v4, 0.0 }
  0x14   : > { %789 = vmatprep.subr.msk.mxu0 %vm351_vm0, %v343_v5  ;;  %v545_v8 = vsel %vm351_vm0, %v343_v5, 0.0 }
  0x15   : > { %790 = vmatpush1.msk.msra.mxu0 %vm351_vm0, %v327_v4  ;;  %v546_v9 = vadd.f32 %v545_v8, %v544_v6 }
  0x16   : > { %791 = vmatmul.mubr.msk.f32.vlgmr.msra.gmra.mrb[0].mxu0 %vm344_vm1, %v328_v7 }
  0x17   : > { %426 = vmatprep.mubr.f32.mxu0 %v882_v0  ;;  %547 = vadd.xlane.f32.xlu1 %v546_v9 }
  0x1a   : > { %792 = vmatmul.mubr.msk.f32.gmra.mrb[2].mxu0 %vm344_vm1, %v329_v10 }
  0x87   : > { %v335_v14 = vpop.permute.xlu0 %334 }
  0x8b   : > { %v340_v20 = vpop.permute.xlu0 %339 }
  0xa4   : > { %v548_v12 = vpop.xlane.xlu1 %547 }
  0xa5   : > { %v549_v13 = vadd.f32 %v548_v12, %v542_v11 }
  0xa7   : > { %551 = vst.msk [vmem:[#allocation2] sm:$0xf] %vm540_vm2, %v549_v13 }
  0xae   : > { %v556_v43 = vld [vmem:[#allocation2] sm:$0xf] }
  0xe9   : > { %v422_v15 = vpop.f32.mrb[0].mxu0 }
  0xea   : > { %v423_v16 = vadd.f32 %v422_v15, %v335_v14  ;;  %v424_v17 = vpop.f32.mrb[1].mxu0 }
  0xeb   : > { %v425_v18 = vadd.f32 %v424_v17, %v335_v14 }
  0xec   : > { %v433_v19 = vmul.f32 0.5, %v423_v16 }
  0xed   : > { %v434_v21 = vmul.f32 0.5, %v425_v18  ;;  %v428_v22 = vpop.f32.mrb[2].mxu0 }
  0xee   : > { %846 = vtanh.f32 %v433_v19  ;;  %v429_v23 = vadd.f32 %v428_v22, %v340_v20  ;;  %v430_v24 = vpop.f32.mrb[3].mxu0 }
  0xef   : > { %848 = vtanh.f32 %v434_v21  ;;  %v431_v25 = vadd.f32 %v430_v24, %v340_v20 }
  0xf0   : > { %v435_v26 = vmul.f32 0.5, %v429_v23 }
  0xf1   : > { %v436_v27 = vmul.f32 0.5, %v431_v25 }
  0xf2   : > { %850 = vtanh.f32 %v435_v26 }
  0xf3   : > { %852 = vtanh.f32 %v436_v27 }
  0xf8   : > { %v847_v28 = vpop.eup %846 }
  0xf9   : > { %v849_v29 = vpop.eup %848  ;;  %v441_v30 = vmul.f32 0.5, %v847_v28 }
  0xfa   : > { %v442_v32 = vmul.f32 0.5, %v849_v29 }
  0xfb   : > { %v445_v36 = vadd.f32 0.5, %v441_v30 }
  0xfc   : > { %v851_v31 = vpop.eup %850  ;;  %v446_v38 = vadd.f32 0.5, %v442_v32 }
  0xfd   : > { %v853_v33 = vpop.eup %852  ;;  %v443_v34 = vmul.f32 0.5, %v851_v31 }
  0xfe   : > { %v444_v35 = vmul.f32 0.5, %v853_v33 }
  0xff   : > { %v447_v37 = vadd.f32 0.5, %v443_v34 }
 0x100   : > { %v448_v39 = vadd.f32 0.5, %v444_v35 }
 0x101   : > { %v813_v40 = vpack.c.bf16 %v447_v37, %v445_v36 }
 0x102   : > { %v810_v41 = vpack.c.bf16 %v448_v39, %v446_v38 }
 0x104   : > { %812 = vmatprep.subr.msk.bf16.mxu1 %vm811_vm4, %v810_v41 }
 0x105   : > { %815 = vmatpush1.bf16.msk.msra.mxu1 %vm811_vm4, %v813_v40 }
 0x106   : > { %805 = vmatprep.subr.mxu1 %v882_v0 }
 0x108   : > { %795 = vmatmul.mubr.msk.f32.vlgmr.msra.gmra.mrb[0].mxu1 %vm450_vm5, %v449_v42 }
 0x109   : > { %806 = vmatpush3.msk.msra.mxu1 %vm351_vm0, %v556_v43  ;;  %807 = vmatprep.mubr.msk.f32.mxu1 %vm885_vm6, %v882_v0 }
 0x10c   : > { %808 = vmatmul.mubr.msk.f32.vlgmr.msra.gmra.mrb[2].mxu1 %vm344_vm1, %v555_v44 }
 0x1db   : > { %v526_v45 = vpop.f32.mrb[0].mxu1 }
 0x1dc   : > { %v528_v46 = vpop.f32.mrb[1].mxu1 }
 0x1dd   : > { %v533_v47 = vcombine.low %v526_v45, %v528_v46 }
 0x1df   : > { %535 = vst [vmem:[%s322_s23] sm:$0xff] %v533_v47  ;;  %v630_v49 = vpop.f32.mrb[2].mxu1 }
 0x1e0   : > { %v631_v50 = vadd.f32 %v630_v49, %v557_v48  ;;  %v809_v51 = vpop.f32.mrb[3].mxu1 }
 0x1e2   : > { %v634_v52 = vmul.f32 0.5, %v631_v50 }
 0x1e4   : > { %854 = vtanh.f32 %v634_v52 }
 0x1ee   : > { %v855_v53 = vpop.eup %854 }
 0x1ef   : > { %v636_v54 = vmul.f32 0.5, %v855_v53 }
 0x1f1   : > { %v637_v55 = vadd.f32 0.5, %v636_v54 }
 0x1f3   : > { %v639_v56 = vsel %vm638_vm7, %v637_v55, 0.0 }
 0x1f4   : > { %v640_v57 = vrot.slane %v639_v56, 4 }
 0x1f6   : > { %v641_v58 = vadd.f32 %v640_v57, %v639_v56 }
 0x1f8   : > { %v642_v59 = vrot.slane %v641_v58, 2 }
 0x1fa   : > { %v643_v60 = vadd.f32 %v642_v59, %v641_v58 }
 0x1fc   : > { %v644_v61 = vrot.slane %v643_v60, 1 }
 0x1fe   : > { %v645_v62 = vadd.f32 %v644_v61, %v643_v60 }
 0x200   : > { %v647_v63 = vmul.f32 0.33333334, %v645_v62 }
 0x202   : > { %v648_v0 = vsub.f32 %v637_v55, %v647_v63 }
 0x204   : > { %v649_v1 = vmul.f32 %v648_v0, %v648_v0 }
 0x206   : > { %v650_v2 = vsel %vm638_vm7, %v649_v1, 0.0 }
 0x207   : > { %v651_v3 = vrot.slane %v650_v2, 4 }
 0x209   : > { %v652_v4 = vadd.f32 %v651_v3, %v650_v2 }
 0x20b   : > { %v653_v5 = vrot.slane %v652_v4, 2 }
 0x20d   : > { %v654_v6 = vadd.f32 %v653_v5, %v652_v4 }
 0x20f   : > { %v655_v7 = vrot.slane %v654_v6, 1 }
 0x211   : > { %v656_v8 = vadd.f32 %v655_v7, %v654_v6 }
 0x213   : > { %v657_v9 = vmul.f32 0.5, %v656_v8 }
 0x215   : > { %v658_v10 = vadd.f32 0.47, %v657_v9 }
 0x217   : > { %v798_v11 = vadd.f32 -0.5, %v658_v10 }
 0x219   : > { %v660_v12 = vmul.f32 100.0, %v798_v11 }
 0x21b   : > { %v661_v13 = vmul.f32 0.5, %v660_v12 }
 0x21d   : > { %856 = vtanh.f32 %v661_v13 }
 0x227   : > { %v857_v14 = vpop.eup %856 }
 0x228   : > { %v663_v15 = vmul.f32 0.5, %v857_v14 }
 0x22a   : > { %v664_v16 = vadd.f32 0.5, %v663_v15 }
 0x22c   : > { %v665_v17 = vmax.f32 %v647_v63, %v664_v16 }
 0x22e   : > { %667 = vst.msk [vmem:[%s326_s9] sm:$0x1] %vm666_vm8, %v665_v17 }
 0x22f PF: > { %s18_s26 = sadd.s32 1, %s880_s26   ;;  %s1014_s24 = smov %s876_s25 }
 0x230   : > { %p15_p5 = scmp.ge.s32.totalorder %s18_s26, 4   ;;  %s1015_s25 = smov %s1017_s27 }
 0x232   :  { %17 = sbr.rel (!%p15_p5) target bundleno = 2 (0x2), region = 94 }

</bundles_post_ra>
